<compile_context>
chip_gen: v6e
topology: v6e:2x2x1
jax: 0.10.0
libtpu: 0.0.40
codegen_flags: <defaults>
</compile_context>

<pallas_src>
import functools

import jax
import jax.numpy as jnp
from jax.experimental import pallas as pl
from jax.experimental.pallas import tpu as pltpu

NEG_SLOPE = 0.01   # nn.LeakyReLU default negative slope


def _leaky_relu(x):
    return jnp.where(x >= 0, x, NEG_SLOPE * x)


def mask_block_kernel(x_ref, w12_ref, b12_ref, w3t_ref, b3_ref, w4_ref, b4_ref,
                      out_ref):
    Bt, N, d = x_ref.shape
    Hk = w12_ref.shape[1] // 2

    # fc1 + fc2 fused into ONE MXU matmul (weights pre-concatenated, pre-transposed and
    # bf16-cast in the wrapper).  bf16 operands, f32 accumulate.
    # TODO(synk): Dropout is treated as identity (eval mode); training-mode stochastic
    # masking (pltpu.prng_*) is intentionally omitted.
    Xb = x_ref[...].reshape(Bt * N, d).astype(jnp.bfloat16)
    Y = jnp.dot(Xb, w12_ref[...], preferred_element_type=jnp.float32) + b12_ref[...]
    # NOTE: the fc1/fc2 split slices lanes at Hk (sub-128): negligible at Hk=16; keep the
    # concat boundary at a multiple of 128 (or pad) if Hk grows.
    X1 = _leaky_relu(Y[:, :Hk]).reshape(Bt, N, Hk)        # fc1 branch (f32)
    X2 = jnp.tanh(Y[:, Hk:]).reshape(Bt, N, Hk)           # fc2 branch (f32)

    # M[b,i,j] = sum_n X1[b,n,i] * X2[b,n,j]  -- transposed-LHS batched matmul on the
    # MXU; no materialized swapaxes / relayout.
    M = jnp.einsum('bni,bnj->bij',
                   X1.astype(jnp.bfloat16), X2.astype(jnp.bfloat16),
                   preferred_element_type=jnp.float32)    # (Bt, Hk, Hk)

    # fc3: Linear(Hk, d) + LeakyReLU as one flattened 2D MXU matmul.
    A3 = jnp.dot(M.reshape(Bt * Hk, Hk).astype(jnp.bfloat16), w3t_ref[...],
                 preferred_element_type=jnp.float32) + b3_ref[...]
    A3 = _leaky_relu(A3).reshape(Bt, Hk, d)               # (Bt, Hk, d), f32

    # fc4 after the permute: logits[b,c] = sum_i w4[i] * A3[b,i,c] + b4.
    # Per-tile broadcast-multiply + sublane (XLU) reduction, kept in f32
    # (w4 is pre-broadcast to (Hk, d) in the wrapper; b4 is an SMEM scalar).
    logits = jnp.sum(A3 * w4_ref[...], axis=1) + b4_ref[0]          # (Bt, d)

    # Softmax over dim=1; EUP reciprocal instead of a per-element VALU divide.
    m = jnp.max(logits, axis=1, keepdims=True)
    e = jnp.exp(logits - m)
    inv = pl.reciprocal(jnp.sum(e, axis=1, keepdims=True), approx=True)
    out_ref[...] = (e * inv).reshape(Bt, 1, d).astype(out_ref.dtype)


def _pick_batch_tile(B, N, d, Hk, per_tile_budget_bytes=8 << 20):
    # Rough f32 per-batch-row working set inside one grid step (x tile is
    # double-buffered by the pipeline; Y/X1/X2/M/A3 are materialized per tile).
    bytes_per_row = 4 * (2 * N * d + 4 * N * Hk + Hk * Hk + 2 * Hk * d + 4 * d)
    bt = max(1, min(B, per_tile_budget_bytes // max(bytes_per_row, 1)))
    while B % bt:          # keep every tile full (no padded-block compute)
        bt -= 1
    return int(bt)


@functools.partial(jax.jit, static_argnames=("batch_tile",))
def mask_block(x, w1, b1, w2, b2, w3, b3, w4, b4, batch_tile=None):
    B, N, d = x.shape
    Hk = w1.shape[0]
    Bt = batch_tile if batch_tile is not None else _pick_batch_tile(B, N, d, Hk)

    # Hoisted parameter prep (tiny, trace/XLA level; keeps the kernel transpose-free).
    f32 = jnp.float32
    w12 = jnp.concatenate([w1, w2], axis=0).T.astype(jnp.bfloat16)   # (d, 2*Hk)
    b12 = jnp.concatenate([b1, b2]).reshape(1, 2 * Hk).astype(f32)   # (1, 2*Hk)
    w3t = w3.T.astype(jnp.bfloat16)                                  # (Hk, d)
    b3r = b3.reshape(1, d).astype(f32)                               # (1, d)
    w4bc = jnp.broadcast_to(w4.astype(f32).reshape(Hk, 1), (Hk, d))  # (Hk, d), f32
    b4r = b4.reshape(1).astype(f32)                                  # (1,), SMEM scalar

    flops = (2 * B * N * d * (2 * Hk) + 2 * B * N * Hk * Hk
             + 2 * B * Hk * Hk * d + 2 * B * Hk * d)
    transcendentals = B * N * Hk + B * d                 # tanh + exp
    bytes_accessed = (4 * x.size + 2 * w12.size + 4 * b12.size + 2 * w3t.size
                      + 4 * b3r.size + 4 * w4bc.size + 4 + 4 * B * d)

    out = pl.pallas_call(
        mask_block_kernel,
        out_shape=jax.ShapeDtypeStruct((B, 1, d), jnp.float32),
        grid=(pl.cdiv(B, Bt),),
        in_specs=[
            pl.BlockSpec((Bt, N, d), lambda i: (i, 0, 0)),        # x: tiled over batch
            pl.BlockSpec((d, 2 * Hk), lambda i: (0, 0)),          # w12 (bf16), resident
            pl.BlockSpec((1, 2 * Hk), lambda i: (0, 0)),          # b12 (f32)
            pl.BlockSpec((Hk, d), lambda i: (0, 0)),              # w3^T (bf16)
            pl.BlockSpec((1, d), lambda i: (0, 0)),               # b3 (f32)
            pl.BlockSpec((Hk, d), lambda i: (0, 0)),              # w4 broadcast (f32)
            pl.BlockSpec(memory_space=pltpu.MemorySpace.SMEM),    # b4 scalar
        ],
        out_specs=pl.BlockSpec((Bt, 1, d), lambda i: (i, 0, 0)),
        cost_estimate=pl.CostEstimate(flops=flops, transcendentals=transcendentals,
                                      bytes_accessed=bytes_accessed),
        compiler_params=pltpu.CompilerParams(
            # Batch tiles are independent -> megacore sharding on v7x (no-op on v5e/v6e).
            dimension_semantics=("parallel",),
            # Sized for v7x's 64 MiB physical VMEM; can be raised toward ~100 MiB on
            # v5e/v6e if batch tiles grow.  On v5e also consider
            # pipeline_mode=pl.Buffered(3) on the x BlockSpec and sweep.
            vmem_limit_bytes=48 * 1024 * 1024,
        ),
    )(x, w12, b12, w3t, b3r, w4bc, b4r)
    return out.reshape(B, d)


def mask_block_ref(x, w1, b1, w2, b2, w3, b3, w4, b4):
    """Pure-JAX reference mirroring the PyTorch forward (Dropout in eval mode)."""
    X1 = _leaky_relu(jnp.einsum('bnd,hd->bnh', x, w1) + b1)      # (B, N, Hk)
    X1 = jnp.swapaxes(X1, 1, 2)                                  # (B, Hk, N)
    X2 = jnp.tanh(jnp.einsum('bnd,hd->bnh', x, w2) + b2)         # (B, N, Hk)
    M = jnp.matmul(X1, X2)                                       # (B, Hk, Hk)
    A3 = _leaky_relu(jnp.einsum('bik,dk->bid', M, w3) + b3)      # (B, Hk, d)
    A3 = jnp.swapaxes(A3, 1, 2)                                  # (B, d, Hk)
    A4 = jnp.einsum('bci,oi->bco', A3, w4)[..., 0] + b4          # (B, d)
    return jax.nn.softmax(A4, axis=1)


if __name__ == "__main__":
    B, N, d, H_k = 4, 8, 32, 16                 # small shapes consistent with the module
    key = jax.random.PRNGKey(0)
    kx, k1w, k1b, k2w, k2b, k3w, k3b, k4w, k4b = jax.random.split(key, 9)

    x = jax.random.normal(kx, (B, N, d), dtype=jnp.float32)
    # nn.Linear weights are (out_features, in_features).
    w1 = 0.1 * jax.random.normal(k1w, (H_k, d), dtype=jnp.float32)
    b1 = 0.1 * jax.random.normal(k1b, (H_k,), dtype=jnp.float32)
    w2 = 0.1 * jax.random.normal(k2w, (H_k, d), dtype=jnp.float32)
    b2 = 0.1 * jax.random.normal(k2b, (H_k,), dtype=jnp.float32)
    w3 = 0.1 * jax.random.normal(k3w, (d, H_k), dtype=jnp.float32)
    b3 = 0.1 * jax.random.normal(k3b, (d,), dtype=jnp.float32)
    w4 = 0.1 * jax.random.normal(k4w, (1, H_k), dtype=jnp.float32)
    b4 = 0.1 * jax.random.normal(k4b, (1,), dtype=jnp.float32)

    # batch_tile=2 -> grid=(2,): exercises the batch pipeline / megacore path.
    out = mask_block(x, w1, b1, w2, b2, w3, b3, w4, b4, batch_tile=2)
    out = jax.block_until_ready(out)

    ref = mask_block_ref(x, w1, b1, w2, b2, w3, b3, w4, b4)
    assert out.shape == (B, d)
    # bf16 MXU operands + approx reciprocal -> slightly looser tolerance than pure f32.
    assert jnp.allclose(out, ref, rtol=2e-2, atol=2e-3), "mismatch vs. pure-JAX reference"
    assert jnp.allclose(jnp.sum(out, axis=1), 1.0, atol=2e-3), "softmax rows must sum to 1"

    print("KERNEL_OK")
</pallas_src>

<mosaic_0001>
module attributes {stable_mosaic.version = 11 : i64} {
  func.func @mask_block_kernel(%arg0: i32, %arg1: memref<2x8x32xf32, #tpu.memory_space<vmem>>, %arg2: memref<32x32xbf16, #tpu.memory_space<vmem>>, %arg3: memref<1x32xf32, #tpu.memory_space<vmem>>, %arg4: memref<16x32xbf16, #tpu.memory_space<vmem>>, %arg5: memref<1x32xf32, #tpu.memory_space<vmem>>, %arg6: memref<16x32xf32, #tpu.memory_space<vmem>>, %arg7: memref<1xf32, #tpu.memory_space<smem>>, %arg8: memref<2x1x32xf32, #tpu.memory_space<vmem>>) attributes {dimension_semantics = [#tpu.dimension_semantics<parallel>], iteration_bounds = array<i64: 2>, scalar_prefetch = 0 : i64, scratch_operands = 0 : i64, tpu.core_type = #tpu.core_type<tc>, window_params = [{transform_indices = @transform_0, window_bounds = array<i64: 2, 8, 32>}, {pipeline_mode = #tpu.pipeline_mode<synchronous>, transform_indices = @transform_1, window_bounds = array<i64: 32, 32>}, {pipeline_mode = #tpu.pipeline_mode<synchronous>, transform_indices = @transform_2, window_bounds = array<i64: 1, 32>}, {pipeline_mode = #tpu.pipeline_mode<synchronous>, transform_indices = @transform_3, window_bounds = array<i64: 16, 32>}, {pipeline_mode = #tpu.pipeline_mode<synchronous>, transform_indices = @transform_4, window_bounds = array<i64: 1, 32>}, {pipeline_mode = #tpu.pipeline_mode<synchronous>, transform_indices = @transform_5, window_bounds = array<i64: 16, 32>}, {transform_indices = @transform_6, window_bounds = array<i64: 1>}, {transform_indices = @transform_7, window_bounds = array<i64: 2, 1, 32>}]} {
    %c0 = arith.constant 0 : index
    %c0_0 = arith.constant 0 : index
    %c0_1 = arith.constant 0 : index
    %0 = vector.load %arg1[%c0, %c0_0, %c0_1] : memref<2x8x32xf32, #tpu.memory_space<vmem>>, vector<2x8x32xf32>
    %1 = vector.shape_cast %0 : vector<2x8x32xf32> to vector<16x32xf32>
    %2 = arith.truncf %1 : vector<16x32xf32> to vector<16x32xbf16>
    %c0_2 = arith.constant 0 : index
    %c0_3 = arith.constant 0 : index
    %3 = vector.load %arg2[%c0_2, %c0_3] : memref<32x32xbf16, #tpu.memory_space<vmem>>, vector<32x32xbf16>
    %cst = arith.constant dense<0.000000e+00> : vector<16x32xf32>
    %4 = tpu.matmul %2, %3, %cst {dimension_numbers = #tpu.dot_dimension_numbers<[1], [0], [0], [1], [0, 0, 1, 1], [], []>} : vector<16x32xbf16>, vector<32x32xbf16>, vector<16x32xf32> -> vector<16x32xf32>
    %c0_4 = arith.constant 0 : index
    %c0_5 = arith.constant 0 : index
    %5 = vector.load %arg3[%c0_4, %c0_5] : memref<1x32xf32, #tpu.memory_space<vmem>>, vector<1x32xf32>
    %6 = vector.broadcast %5 : vector<1x32xf32> to vector<16x32xf32>
    %7 = arith.addf %4, %6 : vector<16x32xf32>
    %8 = vector.extract_strided_slice %7 {offsets = [0, 0], sizes = [16, 16], strides = [1, 1]} : vector<16x32xf32> to vector<16x16xf32>
    %cst_6 = arith.constant 0.000000e+00 : f32
    %9 = vector.broadcast %cst_6 : f32 to vector<16x16xf32>
    %10 = arith.cmpf oge, %8, %9 : vector<16x16xf32>
    %cst_7 = arith.constant 0.00999999977 : f32
    %11 = vector.broadcast %cst_7 : f32 to vector<16x16xf32>
    %12 = arith.mulf %11, %8 : vector<16x16xf32>
    %13 = arith.select %10, %8, %12 : vector<16x16xi1>, vector<16x16xf32>
    %14 = vector.shape_cast %13 : vector<16x16xf32> to vector<2x8x16xf32>
    %15 = vector.extract_strided_slice %7 {offsets = [0, 16], sizes = [16, 16], strides = [1, 1]} : vector<16x32xf32> to vector<16x16xf32>
    %16 = math.tanh %15 : vector<16x16xf32>
    %17 = vector.shape_cast %16 : vector<16x16xf32> to vector<2x8x16xf32>
    %18 = arith.truncf %14 : vector<2x8x16xf32> to vector<2x8x16xbf16>
    %19 = arith.truncf %17 : vector<2x8x16xf32> to vector<2x8x16xbf16>
    "tpu.trace_start"() <{level = 10 : i32, message = "bni,bnj->bij"}> : () -> ()
    %cst_8 = arith.constant dense<0.000000e+00> : vector<2x16x16xf32>
    %20 = tpu.matmul %18, %19, %cst_8 {dimension_numbers = #tpu.dot_dimension_numbers<[1], [1], [2], [2], [0, 0, 0, 2, 1, 2], [0], [0]>} : vector<2x8x16xbf16>, vector<2x8x16xbf16>, vector<2x16x16xf32> -> vector<2x16x16xf32>
    "tpu.trace_stop"() : () -> ()
    %21 = vector.shape_cast %20 : vector<2x16x16xf32> to vector<32x16xf32>
    %22 = arith.truncf %21 : vector<32x16xf32> to vector<32x16xbf16>
    %c0_9 = arith.constant 0 : index
    %c0_10 = arith.constant 0 : index
    %23 = vector.load %arg4[%c0_9, %c0_10] : memref<16x32xbf16, #tpu.memory_space<vmem>>, vector<16x32xbf16>
    %cst_11 = arith.constant dense<0.000000e+00> : vector<32x32xf32>
    %24 = tpu.matmul %22, %23, %cst_11 {dimension_numbers = #tpu.dot_dimension_numbers<[1], [0], [0], [1], [0, 0, 1, 1], [], []>} : vector<32x16xbf16>, vector<16x32xbf16>, vector<32x32xf32> -> vector<32x32xf32>
    %c0_12 = arith.constant 0 : index
    %c0_13 = arith.constant 0 : index
    %25 = vector.load %arg5[%c0_12, %c0_13] : memref<1x32xf32, #tpu.memory_space<vmem>>, vector<1x32xf32>
    %26 = vector.broadcast %25 : vector<1x32xf32> to vector<32x32xf32>
    %27 = arith.addf %24, %26 : vector<32x32xf32>
    %cst_14 = arith.constant 0.000000e+00 : f32
    %28 = vector.broadcast %cst_14 : f32 to vector<32x32xf32>
    %29 = arith.cmpf oge, %27, %28 : vector<32x32xf32>
    %cst_15 = arith.constant 0.00999999977 : f32
    %30 = vector.broadcast %cst_15 : f32 to vector<32x32xf32>
    %31 = arith.mulf %30, %27 : vector<32x32xf32>
    %32 = arith.select %29, %27, %31 : vector<32x32xi1>, vector<32x32xf32>
    %33 = vector.shape_cast %32 : vector<32x32xf32> to vector<2x16x32xf32>
    %c0_16 = arith.constant 0 : index
    %c0_17 = arith.constant 0 : index
    %34 = vector.load %arg6[%c0_16, %c0_17] : memref<16x32xf32, #tpu.memory_space<vmem>>, vector<16x32xf32>
    %35 = vector.shape_cast %34 : vector<16x32xf32> to vector<1x16x32xf32>
    %36 = vector.broadcast %35 : vector<1x16x32xf32> to vector<2x16x32xf32>
    %37 = arith.mulf %33, %36 : vector<2x16x32xf32>
    %cst_18 = arith.constant dense<0.000000e+00> : vector<2x32xf32>
    %38 = vector.multi_reduction <add>, %37, %cst_18 [1] : vector<2x16x32xf32> to vector<2x32xf32>
    %c0_19 = arith.constant 0 : index
    %39 = memref.load %arg7[%c0_19] : memref<1xf32, #tpu.memory_space<smem>>
    %40 = vector.broadcast %39 : f32 to vector<2x32xf32>
    %41 = arith.addf %38, %40 : vector<2x32xf32>
    %cst_20 = arith.constant dense<0xFF800000> : vector<2xf32>
    %42 = vector.multi_reduction <maximumf>, %41, %cst_20 [1] : vector<2x32xf32> to vector<2xf32>
    %43 = vector.shape_cast %42 : vector<2xf32> to vector<2x1xf32>
    %44 = vector.broadcast %43 : vector<2x1xf32> to vector<2x32xf32>
    %45 = arith.subf %41, %44 : vector<2x32xf32>
    %46 = math.exp %45 : vector<2x32xf32>
    %cst_21 = arith.constant dense<0.000000e+00> : vector<2xf32>
    %47 = vector.multi_reduction <add>, %46, %cst_21 [1] : vector<2x32xf32> to vector<2xf32>
    %48 = vector.shape_cast %47 : vector<2xf32> to vector<2x1xf32>
    %49 = tpu.reciprocal %48 {approx = true} : vector<2x1xf32> -> vector<2x1xf32>
    %50 = vector.broadcast %49 : vector<2x1xf32> to vector<2x32xf32>
    %51 = arith.mulf %46, %50 : vector<2x32xf32>
    %52 = vector.shape_cast %51 : vector<2x32xf32> to vector<2x1x32xf32>
    %c0_22 = arith.constant 0 : index
    %c0_23 = arith.constant 0 : index
    %c0_24 = arith.constant 0 : index
    %53 = vector.load %arg8[%c0_22, %c0_23, %c0_24] : memref<2x1x32xf32, #tpu.memory_space<vmem>>, vector<2x1x32xf32>
    tpu.vector_store %arg8[%c0_22, %c0_23, %c0_24], %52 {strides = array<i32>} : memref<2x1x32xf32, #tpu.memory_space<vmem>>, vector<2x1x32xf32>,
    return
  }
  func.func @transform_0(%arg0: i32) -> (i32, i32, i32) {
    %c0_i32 = arith.constant 0 : i32
    %c0_i32_0 = arith.constant 0 : i32
    %c0_i32_1 = arith.constant 0 : i32
    return %arg0, %c0_i32, %c0_i32_0 : i32, i32, i32
  }
  func.func @transform_1(%arg0: i32) -> (i32, i32) {
    %c0_i32 = arith.constant 0 : i32
    %c0_i32_0 = arith.constant 0 : i32
    %c0_i32_1 = arith.constant 0 : i32
    return %c0_i32, %c0_i32_0 : i32, i32
  }
  func.func @transform_2(%arg0: i32) -> (i32, i32) {
    %c0_i32 = arith.constant 0 : i32
    %c0_i32_0 = arith.constant 0 : i32
    %c0_i32_1 = arith.constant 0 : i32
    return %c0_i32, %c0_i32_0 : i32, i32
  }
  func.func @transform_3(%arg0: i32) -> (i32, i32) {
    %c0_i32 = arith.constant 0 : i32
    %c0_i32_0 = arith.constant 0 : i32
    %c0_i32_1 = arith.constant 0 : i32
    return %c0_i32, %c0_i32_0 : i32, i32
  }
  func.func @transform_4(%arg0: i32) -> (i32, i32) {
    %c0_i32 = arith.constant 0 : i32
    %c0_i32_0 = arith.constant 0 : i32
    %c0_i32_1 = arith.constant 0 : i32
    return %c0_i32, %c0_i32_0 : i32, i32
  }
  func.func @transform_5(%arg0: i32) -> (i32, i32) {
    %c0_i32 = arith.constant 0 : i32
    %c0_i32_0 = arith.constant 0 : i32
    %c0_i32_1 = arith.constant 0 : i32
    return %c0_i32, %c0_i32_0 : i32, i32
  }
  func.func @transform_6(%arg0: i32) -> i32 {
    %c0_i32 = arith.constant 0 : i32
    %c0_i32_0 = arith.constant 0 : i32
    return %c0_i32 : i32
  }
  func.func @transform_7(%arg0: i32) -> (i32, i32, i32) {
    %c0_i32 = arith.constant 0 : i32
    %c0_i32_0 = arith.constant 0 : i32
    %c0_i32_1 = arith.constant 0 : i32
    return %arg0, %c0_i32, %c0_i32_0 : i32, i32, i32
  }
}

</mosaic_0001>

<bundles_post_ra>
// kernel: mask_block.1
= control target key start
LH: loop header
LB: loop body
LE: loop exit
PB: predicated region body
PF: predicated region fallthrough
CT: control target
= control target key end

     0   :  { %s1087_s0 = inlined_call_operand.vmem [shape: f32[4,8,32], index: 0, kind: input, shape index: {}]   ;;  %s1088_s1 = inlined_call_operand.vmem [shape: bf16[32,32], index: 1, kind: input, shape index: {}]   ;;  %s1089_s2 = inlined_call_operand.vmem [shape: f32[1,32], index: 2, kind: input, shape index: {}]   ;;  %s1090_s3 = inlined_call_operand.vmem [shape: bf16[16,32], index: 3, kind: input, shape index: {}]   ;;  %s1091_s4 = inlined_call_operand.vmem [shape: f32[1,32], index: 4, kind: input, shape index: {}]   ;;  %s1092_s5 = inlined_call_operand.vmem [shape: f32[16,32], index: 5, kind: input, shape index: {}]   ;;  %s1093_s6 = inlined_call_operand.<no memory space> [shape: f32[1], index: 6, kind: input, shape index: {}]   ;;  %s1094_s7 = inlined_call_operand.hbm [shape: f32[4,1,32], index: 7, kind: output, shape index: {}]  }
   0x1   :  { %12 = sst [smem:[#allocation2]] %s1093_s6 }
   0x2   :  { %13 = vsyncpa [#allocation4], 0 }
   0x3   :  { %15 = vsyncpa [#allocation4 + $0x1], 0  ;;  %s953_s26 = smov 0   ;;  %s955_s27 = smov 0  }
   0x4   :  { %s957_s28 = smov 0   ;;  %s959_s29 = smov 0  }
   0x5 LB: > { %s974_s6 = sadd.s32 4294967295, %s902_s29   ;;  %s725_s30 = sadd.s32 4294967294, %s902_s29   ;;  %s902_s29 = sphi %s959_s29, %s1100_s29   ;;  %s898_s28 = sphi %s957_s28, %s1099_s28   ;;  %s894_s27 = sphi %s955_s27, %s1098_s27   ;;  %s890_s26 = sphi %s953_s26, %s1097_s26  }
   0x6   : > { %s978_s8 = sadd.s32 1, %s902_s29   ;;  %s180_s9 = sadd.s32 1, %s898_s28 }
   0x7   : > { %s177_s10 = ssub.s32 %s902_s29, %s978_s8  ;;  %p190_p0 = scmp.ne.s32.totalorder %s898_s28, %s894_s27 }
   0x8   : > { %p178_p1 = scmp.eq.s32.totalorder %s177_s10, 0  ;;  %p191_p2 = scmp.eq.s32.totalorder %s974_s6, 1 }
   0x9   : > { %p196_p3 = scmp.ne.s32.totalorder %s894_s27, %s890_s26  ;;  %p197_p4 = scmp.eq.s32.totalorder %s725_s30, 1 }
   0xa   : > { %s989_s11 = scalar_select %p178_p1, %s898_s28, %s180_s9  }
   0xb   : > { %p991_p5 = por %p191_p2, %p190_p0  ;;  %p995_p6 = por %p197_p4, %p196_p3 }
   0xc   : > { %p728_p7 = scmp.ge.s32.totalorder %s902_s29, 1  ;;  %p242_p8 = scmp.lt.s32.totalorder %s902_s29, 3 }
   0xe   : > { %p243_p9 = pnand %p728_p7, %p242_p8 }
   0xf   : > { %s730_s18 = sshll.u32 (!%p243_p9), %s974_s6, 1  ;;  %s906_s25 = smov (!%p243_p9), 112  }
  0x10   : > { %246 = sbr.rel (%p243_p9) target bundleno = 1124 (0x464), region = 48  ;;  %p275_p10 = scmp.lt.s32.totalorder (!%p243_p9), %s730_s18, 3 }
  0x11   : > { %s271_s20 = sand.u32 (!%p243_p9), 1, %s894_s27   ;;  %s907_s14 = smov (!%p243_p9), [#allocation3]  }
  0x12   : > { %s729_s21 = sshll.u32 (!%p243_p9), %s271_s20, 1  ;;  %s846_s15 = sshll.u32 (!%p243_p9), %s907_s14, 4  ;;  %s847_s15 = int_to_ptr.vmem [resolvable:$false] %s846_s15 }
  0x13   : > { %s273_s23 = scalar_lea.vmem (!%p243_p9), [#allocation3], %s729_s21  ;;  %s848_s16 = scalar_lea.vmem (!%p243_p9), %s847_s15, 64 }
  0x14   : > { %s663_s24 = sshll.u32 (!%p243_p9), %s273_s23, 4  ;;  %s1045_s24 = int_to_ptr.vmem [resolvable:$true] %s663_s24 }
  0x15   : > { %v829_v0 = vld [vmem:[%s1088_s1 + $0x8] sm:$0xff]   ;;  %v904_v1 = vmov 0.0   ;;  %v830_v2 = vld [vmem:[%s1088_s1] sm:$0xff]   ;;  %vm905_vm0 = vmmov 0   ;;  %s1102_s18 = smov (!%p275_p10, %s730_s18), 3  ;;  %vm308_vm1 = vcmask 261120   ;;  %p849_p0 = scmp.lt.s32.totalorder %s1045_s24, %s847_s15 }
  0x16   : > { %758 = vmatprep.subr.bf16.mxu0 %v904_v1  ;;  %766 = vmatprep.subr.bf16.mxu1 %v904_v1  ;;  %s731_s19 = sshll.u32 %s1102_s18, 3  ;;  %v732_v6 = vld [vmem:[%s1089_s2] ss:$0 sm:$0xff]  ;;  %vm388_vm4 = vcmask 1043456   ;;  %vm384_vm5 = vcmask 64512   ;;  %vm516_vm6 = vcmask 130048  }
  0x17   : > { %759 = vmatpush3.bf16.msra.mxu0 %v829_v0  ;;  %762 = vmatprep.mubr.msk.bf16.mxu0 %vm905_vm0, %v904_v1  ;;  %s278_s22 = scalar_lea.vmem %s1087_s0, %s731_s19  ;;  %v831_v29 = vld [vmem:[%s1090_s3] sm:$0xff]   ;;  %v585_v54 = vld [vmem:[%s1092_s5 + $0x8] sm:$0xff]  ;;  %s608_s19 = sld [smem:[#allocation2]]  ;;  %vm614_vm11 = vcmask 1041409   ;;  %vm617_vm12 = vcmask 254976   ;;  %vm646_vm13 = vcmask 253952  }
  0x18   : > { %760 = vmatprep.subr.bf16.mxu0 %v904_v1  ;;  %768 = vmatprep.mubr.msk.bf16.mxu1 %vm905_vm0, %v904_v1  ;;  %v282_v3 = vld [vmem:[%s278_s22] sm:$0xff]  ;;  %v283_v4 = vld [vmem:[%s278_s22 + $0x8] sm:$0xff]  ;;  %s747_s22 = sshll.u32 %s974_s6, 5  ;;  %s1047_s6 = scalar_lea.sflag [#allocation4], %s271_s20 }
  0x19   : > { %v284_v5 = vpack.c.bf16 %v283_v4, %v282_v3  ;;  %v738_v40 = vld [vmem:[%s1091_s4] ss:$0 sm:$0xff]  ;;  %s1043_s9 = scalar_lea.hbm %s1094_s7, %s747_s22  ;;  %s842_s10 = scalar_lea.vmem %s1045_s24, 32 }
  0x1a   : > { %v584_v48 = vld [vmem:[%s1092_s5] sm:$0xff]  ;;  %p843_p11 = scmp.ne.s32.totalorder %s1045_s24, %s842_s10  ;;  %p850_p1 = scmp.lt.s32.totalorder %s848_s16, %s842_s10 }
  0x1b   : > { %761 = vmatpush3.bf16.msra.mxu0 %v830_v2 }
  0x1c   : > { %778 = vmatprep.subr.bf16.mxu0 %v831_v29  ;;  %p844_p12 = pnand %p843_p11, %p991_p5  ;;  %p851_p2 = por %p850_p1, %p849_p0 }
  0x1e   : > { %763 = vmatmul.mubr.msk.bf16.vlgmr.msra.gmra.mxu0 %vm308_vm1, %v284_v5  ;;  %p845_p13 = pneg %p844_p12 }
  0x1f   : > { %779 = vmatpush3.bf16.msra.mxu0 %v831_v29 }
  0x20   : > { %p852_p3 = pnand %p851_p2, %p845_p13 }
  0xde   : > { %v346_v7 = vpop.f32.mrf.mxu0 }
  0xdf   : > { %v347_v8 = vadd.f32 %v732_v6, %v346_v7 }
  0xe0   : > { %v764_v9 = vpop.f32.mrf.mxu0 }
  0xe1   : > { %vm353_vm2 = vcmp.ge.f32.partialorder %v347_v8, 0.0  ;;  %v355_v10 = vmul.f32 0.01, %v347_v8  ;;  %832 = vtanh.f32 %v347_v8 }
  0xe2   : > { %v349_v11 = vpop.f32.mrf.mxu0 }
  0xe3   : > { %v350_v12 = vadd.f32 %v732_v6, %v349_v11  ;;  %v357_v13 = vsel %vm353_vm2, %v347_v8, %v355_v10 }
  0xe4   : > { %v765_v14 = vpop.f32.mrf.mxu0  ;;  %v361_v15 = vpack.c.bf16 %v357_v13, %v357_v13 }
  0xe5   : > { %vm354_vm3 = vcmp.ge.f32.partialorder %v350_v12, 0.0  ;;  %v356_v16 = vmul.f32 0.01, %v350_v12  ;;  %834 = vtanh.f32 %v350_v12 }
  0xe6   : > { %365 = vxpose.xlu1.c.b16.start.end [1/1] (short) (narrow) %v361_v15, 16 }
  0xe7   : > { %v358_v17 = vsel %vm354_vm3, %v350_v12, %v356_v16  ;;  %v609_v16 = vstv %s608_s19 }
  0xe8   : > { %v362_v18 = vpack.c.bf16 %v358_v17, %v358_v17 }
  0xea   : > { %433 = vxpose.xlu1.c.b16.start.end [1/1] (short) (narrow) %v362_v18, 16 }
  0xee   : > { %v833_v19 = vpop.eup %832 }
  0xef   : > { %v363_v20 = vpack.c.bf16 %v833_v19, %v833_v19 }
  0xf1   : > { %382 = vrot.lane.b32.xlu0 %v363_v20, %s906_s25 }
  0xf2   : > { %v835_v21 = vpop.eup %834 }
  0xf3   : > { %v364_v22 = vpack.c.bf16 %v835_v21, %v835_v21 }
  0xf5   : > { %450 = vrot.lane.b32.xlu0 %v364_v22, %s906_s25 }
 0x148   : > { %v373_v25 = vpop.trf.xlu1 }
 0x14c   : > { %v441_v28 = vpop.trf.xlu1 }
 0x163   : > { %v383_v23 = vpop.permute.xlu0 %382 }
 0x164   : > { %v390_v24 = vsel %vm388_vm4, %v383_v23, 0 }
 0x165   : > { %767 = vmatpush3.bf16.msra.mxu1 %v390_v24 }
 0x166   : > { %772 = vmatprep.subr.bf16.mxu1 %v904_v1 }
 0x167   : > { %v451_v26 = vpop.permute.xlu0 %450 }
 0x168   : > { %v456_v27 = vsel %vm388_vm4, %v451_v26, 0  ;;  %769 = vmatmul.mubr.msk.bf16.vlgmr.msra.gmra.mxu1 %vm384_vm5, %v373_v25 }
 0x169   : > { %773 = vmatpush3.bf16.msra.mxu1 %v456_v27  ;;  %774 = vmatprep.mubr.msk.bf16.mxu1 %vm905_vm0, %v904_v1 }
 0x170   : > { %775 = vmatmul.mubr.msk.bf16.vlgmr.msra.gmra.mxu1 %vm384_vm5, %v441_v28 }
 0x228   : > { %v426_v30 = vpop.f32.mrf.mxu1 }
 0x22a   : > { %v770_v31 = vpop.f32.mrf.mxu1 }
 0x22c   : > { %v429_v32 = vpop.f32.mrf.mxu1 }
 0x22d   : > { %v499_v33 = vpack.c.bf16 %v429_v32, %v426_v30 }
 0x22e   : > { %v771_v34 = vpop.f32.mrf.mxu1 }
 0x22f   : > { %780 = vmatprep.mubr.msk.bf16.mxu0 %vm516_vm6, %v499_v33 }
 0x230   : > { %v492_v35 = vpop.f32.mrf.mxu1 }
 0x232   : > { %v776_v36 = vpop.f32.mrf.mxu1 }
 0x234   : > { %v495_v37 = vpop.f32.mrf.mxu1 }
 0x235   : > { %v500_v38 = vpack.c.bf16 %v495_v37, %v492_v35 }
 0x236   : > { %v777_v39 = vpop.f32.mrf.mxu1 }
 0x237   : > { %781 = vmatmul.mubr.msk.bf16.vlgmr.msra.gmra.mxu0 %vm516_vm6, %v500_v38 }
 0x2f7   : > { %v782_v41 = vpop.f32.mrf.mxu0 }
 0x2f8   : > { %v566_v42 = vadd.f32 %v782_v41, %v738_v40 }
 0x2f9   : > { %v557_v43 = vpop.f32.mrf.mxu0 }
 0x2fa   : > { %vm574_vm7 = vcmp.ge.f32.partialorder %v566_v42, 0.0  ;;  %v578_v44 = vmul.f32 0.01, %v566_v42  ;;  %v558_v45 = vadd.f32 %v738_v40, %v557_v43 }
 0x2fb   : > { %v783_v46 = vpop.f32.mrf.mxu0 }
 0x2fc   : > { %v582_v47 = vsel %vm574_vm7, %v566_v42, %v578_v44  ;;  %vm572_vm8 = vcmp.ge.f32.partialorder %v558_v45, 0.0  ;;  %v576_v49 = vmul.f32 0.01, %v558_v45  ;;  %v569_v50 = vadd.f32 %v783_v46, %v738_v40 }
 0x2fd   : > { %v560_v51 = vpop.f32.mrf.mxu0  ;;  %v588_v56 = vmul.f32 %v584_v48, %v582_v47 }
 0x2fe   : > { %v580_v52 = vsel %vm572_vm8, %v558_v45, %v576_v49  ;;  %vm575_vm9 = vcmp.ge.f32.partialorder %v569_v50, 0.0  ;;  %v579_v53 = vmul.f32 0.01, %v569_v50  ;;  %v561_v55 = vadd.f32 %v738_v40, %v560_v51 }
 0x2ff   : > { %v586_v59 = vmul.f32 %v584_v48, %v580_v52  ;;  %v599_v62 = vsel %vm308_vm1, %v588_v56, 0.0 }
 0x300   : > { %v583_v57 = vsel %vm575_vm9, %v569_v50, %v579_v53  ;;  %vm573_vm10 = vcmp.ge.f32.partialorder %v561_v55, 0.0  ;;  %v577_v58 = vmul.f32 0.01, %v561_v55 }
 0x301   : > { %v589_v60 = vmul.f32 %v585_v54, %v583_v57  ;;  %v590_v2 = vsel %vm308_vm1, %v586_v59, 0.0 }
 0x302   : > { %v581_v61 = vsel %vm573_vm10, %v561_v55, %v577_v58 }
 0x303   : > { %v600_v63 = vsel %vm308_vm1, %v589_v60, 0.0  ;;  %v587_v0 = vmul.f32 %v585_v54, %v581_v61 }
 0x304   : > { %v601_v1 = vadd.f32 %v600_v63, %v599_v62 }
 0x305   : > { %v591_v3 = vsel %vm308_vm1, %v587_v0, 0.0 }
 0x306   : > { %v602_v4 = vrot.slane %v601_v1, 4  ;;  %v592_v5 = vadd.f32 %v591_v3, %v590_v2 }
 0x308   : > { %v603_v6 = vadd.f32 %v602_v4, %v601_v1  ;;  %v593_v7 = vrot.slane %v592_v5, 4 }
 0x30a   : > { %v594_v8 = vadd.f32 %v593_v7, %v592_v5  ;;  %v604_v9 = vrot.slane %v603_v6, 2 }
 0x30c   : > { %v595_v10 = vrot.slane %v594_v8, 2  ;;  %v605_v11 = vadd.f32 %v604_v9, %v603_v6 }
 0x30e   : > { %v596_v12 = vadd.f32 %v595_v10, %v594_v8  ;;  %v606_v13 = vrot.slane %v605_v11, 1 }
 0x310   : > { %v597_v14 = vrot.slane %v596_v12, 1  ;;  %v607_v15 = vadd.f32 %v606_v13, %v605_v11 }
 0x312   : > { %v598_v17 = vadd.f32 %v597_v14, %v596_v12  ;;  %v611_v19 = vadd.f32 %v609_v16, %v607_v15 }
 0x314   : > { %v610_v18 = vadd.f32 %v609_v16, %v598_v17 }
 0x316   : > { %v615_v20 = vsel %vm614_vm11, %v611_v19, %v610_v18 }
 0x317   : > { %v618_v21 = vsel %vm617_vm12, %v615_v20, -inf }
 0x318   : > { %619 = vmax.xlane.f32.xlu0 %v618_v21 }
 0x3a1   : > { %v620_v22 = vpop.xlane.xlu0 %619 }
 0x3a2   : > { %v622_v23 = vrot.slane %v620_v22, 1  ;;  %v625_v24 = vsub.f32 %v610_v18, %v620_v22 }
 0x3a4   : > { %v626_v25 = vsub.f32 %v611_v19, %v622_v23  ;;  %v627_v26 = vmul.f32 1.442695, %v625_v24 }
 0x3a6   : > { %v629_v27 = vmul.f32 1.442695, %v626_v25 }
 0x3a8   : > { %836 = vpow2.f32 %v629_v27 }
 0x3a9   : > { %838 = vpow2.f32 %v627_v26 }
 0x3b5   : > { %v837_v28 = vpop.eup %836 }
 0x3b6   : > { %v633_v29 = vrot.slane %v837_v28, 7  ;;  %v839_v30 = vpop.eup %838 }
 0x3b8   : > { %v634_v31 = vsel %vm614_vm11, %v633_v29, %v839_v30 }
 0x3b9   : > { %v636_v32 = vsel %vm617_vm12, %v634_v31, 0.0 }
 0x3ba   : > { %637 = vadd.xlane.f32.xlu1 %v636_v32 }
 0x443   : > { %v638_v33 = vpop.xlane.xlu1 %637 }
 0x444   : > { %840 = vrcp.f32 %v638_v33 }
 0x451   : > { %v841_v34 = vpop.eup %840 }
 0x452   : > { %v641_v35 = vrot.slane %v841_v34, 1  ;;  %v644_v36 = vmul.f32 %v841_v34, %v839_v30 }
 0x454   : > { %v645_v37 = vmul.f32 %v837_v28, %v641_v35  ;;  %647 = vst.msk [vmem:[%s273_s23] sm:$0x1] %vm646_vm13, %v644_v36 }
 0x456   : > { %648 = vst.msk [vmem:[%s273_s23 + $0x1] sm:$0x1] %vm646_vm13, %v645_v37 }
 0x457   : > { %855 = shalt.err (!%p852_p3)
}
 0x458   : > { %s856_s17 = scalar_lea.hbm %s1043_s9, 32  ;;  %s860_s20 = scalar_lea.hbm %s1094_s7, 64 }
 0x459   : > { %p857_p4 = scmp.ne.s32.totalorder %s1043_s9, %s856_s17  ;;  %p861_p9 = scmp.lt.s32.totalorder %s1043_s9, %s1094_s7 }
 0x45a   : > { %p862_p10 = scmp.lt.s32.totalorder %s860_s20, %s856_s17 }
 0x45b   : > { %p858_p7 = pnand %p857_p4, %p991_p5 }
 0x45c   : > { %p863_p11 = por %p862_p10, %p861_p9 }
 0x45d   : > { %p859_p8 = pneg %p858_p7 }
 0x45f   : > { %p864_p12 = pnand %p863_p11, %p859_p8 }
 0x461   : > { %867 = shalt.err (!%p864_p12)
}
 0x462   : > { %s908_s23 = smov 16   ;;  %s909_s25 = smov 1  }
 0x463   : > { %784 = dma.vmem_to_hbm [thread:$0]  (%p991_p5), %s1045_s24, 32, %s1043_s9, %s1047_s6, %s908_s23, %s908_s23, %s909_s25  }
 0x464 PF: > { %p790_p13 = scmp.ge.s32.totalorder %s902_s29, 2  ;;  %s678_s30 = sand.u32 1, %s890_s26  }
 0x465   : > { %s679_s10 = scalar_lea.sflag [#allocation4], %s678_s30 }
 0x466   : > { %p787_p0 = pnand %p790_p13, %p995_p6 }
 0x468   : > { %p788_p1 = pneg %p787_p0 }
 0x46a   : > { %885 = dma.done.wait (%p788_p1), %s679_s10, 32  }
 0x46b   : > { %887 = vsyncadd (%p788_p1), %s679_s10, 4294967264  ;;  %p18_p2 = scmp.ge.s32.totalorder %s978_s8, 4   ;;  %s1097_s26 = smov %s894_s27 }
 0x46c   : > { %s1098_s27 = smov %s898_s28  ;;  %s1099_s28 = smov %s989_s11 }
 0x46d   : > { %s1100_s29 = smov %s978_s8  ;;  %20 = sbr.rel (!%p18_p2) target bundleno = 5 (0x5), region = 83 }
 0x472   :  { %684 = vsyncpa [#allocation4], 1 }
 0x473   :  { %686 = vsyncpa [#allocation4 + $0x1], 1 }

</bundles_post_ra>
